<compile_context>
chip_gen: v6e
topology: v6e:2x2x1
jax: 0.10.0
libtpu: 0.0.40
codegen_flags: <defaults>
</compile_context>

<pallas_src>
import functools

import jax
import jax.numpy as jnp
from jax import lax
from jax.experimental import pallas as pl
from jax.experimental.pallas import tpu as pltpu

LANES = 128
SUBLANES = 8                            # accumulator = one f32 vreg: (8, 128)
TARGET_BLOCK_BYTES = 2 * 1024 * 1024    # ~2 MiB native-dtype bytes per input block
INNER_CHUNK_ROWS = 512                  # preferred rows per inner fold step
VMEM_LIMIT_BYTES = 48 * 1024 * 1024     # safe on v5e/v6e (128 MiB) and v7x (64 MiB)


def _sublane_multiple(*dtypes):
    """Second-to-last tile-dim multiple required by the narrowest dtype."""
    m = SUBLANES
    for dt in dtypes:
        m = max(m, 32 // max(1, jnp.dtype(dt).itemsize))
    return m


def _num_tensorcores():
    """Best-effort TensorCores-per-device (2 on megacore v4/v5p and dual-TC v7x)."""
    try:
        kind = jax.devices()[0].device_kind.lower()
    except Exception:
        return 1
    for tag in ("v7", "v5p", "v4"):
        if tag in kind:
            return 2
    return 1


def _pick_chunk_rows(tile_rows, sub):
    """Largest power-of-two chunk (>= native sublane pack) dividing tile_rows."""
    for c in (INNER_CHUNK_ROWS, 256, 128, 64, 32, 16, 8):
        if c >= sub and c <= tile_rows and tile_rows % c == 0:
            return c
    return tile_rows  # tile_rows is always a multiple of `sub` (>= 8)


def _iou_partial_kernel(x_ref, y_ref, inter_ref, total_ref, *,
                        tile_rows, chunk_rows, steps, total_rows,
                        mask_from_tile, needs_mask):
    c = pl.program_id(0)          # "parallel" split index
    i = pl.program_id(1)          # "arbitrary" step within the split
    g = c * steps + i             # global tile index (may exceed last tile)

    @pl.when(i == 0)
    def _init():
        inter_ref[...] = jnp.zeros_like(inter_ref)
        total_ref[...] = jnp.zeros_like(total_ref)

    def accumulate(row_limit):
        # row_limit is None on the fast path (no masking code emitted at all),
        # or a traced scalar = number of valid rows in this tile.
        n_chunks = tile_rows // chunk_rows

        def fold(r0, crows):
            xs = x_ref[pl.ds(r0, crows), :].astype(jnp.float32)
            ys = y_ref[pl.ds(r0, crows), :].astype(jnp.float32)
            if row_limit is not None:
                rid = r0 + lax.broadcasted_iota(jnp.int32, (crows, LANES), 0)
                valid = rid < row_limit
                xs = jnp.where(valid, xs, 0.0)
                ys = jnp.where(valid, ys, 0.0)
            # Reshape splits the sublane-major dim exactly on vreg boundaries,
            # so the fold is pure VPU adds (no cross-lane movement).
            s3 = (crows // SUBLANES, SUBLANES, LANES)
            return (jnp.sum((xs * ys).reshape(s3), axis=0),
                    jnp.sum((xs + ys).reshape(s3), axis=0))

        if n_chunks == 1:
            p, s = fold(0, tile_rows)
        else:
            zero = jnp.zeros((SUBLANES, LANES), jnp.float32)

            def body(k, carry):
                ia, ta = carry
                r0 = pl.multiple_of(k * chunk_rows, chunk_rows)
                pc, sc = fold(r0, chunk_rows)
                return ia + pc, ta + sc

            p, s = lax.fori_loop(0, n_chunks, body, (zero, zero),
                                 unroll=min(8, n_chunks))

        inter_ref[...] += p[None]
        total_ref[...] += s[None]

    if not needs_mask:
        accumulate(None)
    else:
        @pl.when(g < mask_from_tile)
        def _fast():
            accumulate(None)

        @pl.when(g >= mask_from_tile)
        def _masked():
            # Covers (a) the last real, possibly partial tile and (b) every
            # clamped duplicate step (row_limit <= 0 -> contributes zero).
            accumulate(total_rows - g * tile_rows)


def iou_loss(inputs, targets, smooth=1.0, num_splits=None):
    """Pallas TPU implementation of IoULoss.forward."""
    assert inputs.shape == targets.shape, "inputs/targets shape mismatch"

    x = jnp.ravel(inputs)
    y = jnp.ravel(targets)
    n = x.shape[0]

    sub = _sublane_multiple(x.dtype, y.dtype)

    # Pad (zeros are neutral for both reductions) only to the next lane
    # boundary so the (rows, 128) reshape is a free view; lane-aligned sizes
    # (the common case) make no copy at all.  Tiny inputs round up to one
    # native (sub, 128) tile.
    padded = max(pl.cdiv(n, LANES) * LANES, sub * LANES)
    if padded != n:
        x = jnp.pad(x, (0, padded - n))
        y = jnp.pad(y, (0, padded - n))

    rows = padded // LANES
    x2d = x.reshape(rows, LANES)
    y2d = y.reshape(rows, LANES)

    # Constant-byte input blocks (~2 MiB of native dtype) regardless of dtype.
    itemsize = max(jnp.dtype(x.dtype).itemsize, jnp.dtype(y.dtype).itemsize)
    target_rows = max(sub, TARGET_BLOCK_BYTES // (LANES * itemsize))
    tile_rows = min(target_rows, (rows // sub) * sub)   # multiple of sub, <= rows
    chunk_rows = _pick_chunk_rows(tile_rows, sub)

    total_tiles = pl.cdiv(rows, tile_rows)
    if num_splits is None:
        num_splits = _num_tensorcores()
    num_splits = max(1, min(num_splits, total_tiles))
    steps = pl.cdiv(total_tiles, num_splits)

    # First global tile index that needs the masked path: the last real tile
    # if it is row-partial, plus any clamped duplicate steps beyond it.
    mask_from_tile = total_tiles - 1 if (rows % tile_rows) else total_tiles
    needs_mask = mask_from_tile < num_splits * steps

    def in_index_map(c, i):
        # Clamp so the DMA never starts past the last tile; duplicate steps
        # contribute exactly zero via the in-kernel row mask.
        return (jnp.minimum(c * steps + i, total_tiles - 1), 0)

    kernel = functools.partial(
        _iou_partial_kernel,
        tile_rows=tile_rows, chunk_rows=chunk_rows, steps=steps,
        total_rows=rows, mask_from_tile=mask_from_tile, needs_mask=needs_mask)

    acc_shape = jax.ShapeDtypeStruct((num_splits, SUBLANES, LANES), jnp.float32)
    inter_p, total_p = pl.pallas_call(
        kernel,
        out_shape=(acc_shape, acc_shape),
        grid_spec=pltpu.PrefetchScalarGridSpec(
            num_scalar_prefetch=0,
            grid=(num_splits, steps),
            in_specs=[
                pl.BlockSpec((tile_rows, LANES), in_index_map),
                pl.BlockSpec((tile_rows, LANES), in_index_map),
            ],
            out_specs=[
                pl.BlockSpec((1, SUBLANES, LANES), lambda c, i: (c, 0, 0)),
                pl.BlockSpec((1, SUBLANES, LANES), lambda c, i: (c, 0, 0)),
            ],
        ),
        compiler_params=pltpu.CompilerParams(
            dimension_semantics=("parallel", "arbitrary"),
            vmem_limit_bytes=VMEM_LIMIT_BYTES),
    )(x2d, y2d)

    # Tiny final reductions + scalar epilogue in plain JAX.
    intersection = jnp.sum(inter_p)
    total = jnp.sum(total_p)
    union = total - intersection
    smooth = jnp.float32(smooth)
    return 1.0 - (intersection + smooth) / (union + smooth)


def iou_loss_ref(inputs, targets, smooth=1.0):
    x = jnp.ravel(inputs).astype(jnp.float32)
    y = jnp.ravel(targets).astype(jnp.float32)
    intersection = jnp.sum(x * y)
    total = jnp.sum(x + y)
    union = total - intersection
    return 1.0 - (intersection + smooth) / (union + smooth)


if __name__ == "__main__":
    key = jax.random.PRNGKey(0)
    k1, k2, k3, k4 = jax.random.split(key, 4)

    # Small NCHW-style check (predicted probabilities vs. binary masks).
    shape = (2, 4, 16, 16)
    inputs = jax.nn.sigmoid(jax.random.normal(k1, shape, dtype=jnp.float32))
    targets = (jax.random.uniform(k2, shape) > 0.5).astype(jnp.float32)
    loss = jax.block_until_ready(iou_loss(inputs, targets, smooth=1.0))
    ref = jax.block_until_ready(iou_loss_ref(inputs, targets, smooth=1.0))
    assert jnp.allclose(loss, ref, atol=1e-5, rtol=1e-5), (loss, ref)

    # Larger ragged check: exercises the lane pad, multi-tile grid, the
    # pl.when-gated masked edge tile and (on multi-TC parts) the core split.
    shape2 = (1, 1, 503, 611)
    inputs2 = jax.nn.sigmoid(jax.random.normal(k3, shape2, dtype=jnp.float32))
    targets2 = (jax.random.uniform(k4, shape2) > 0.5).astype(jnp.float32)
    loss2 = jax.block_until_ready(iou_loss(inputs2, targets2, smooth=1.0))
    ref2 = jax.block_until_ready(iou_loss_ref(inputs2, targets2, smooth=1.0))
    assert jnp.allclose(loss2, ref2, atol=1e-4, rtol=1e-4), (loss2, ref2)

    print("KERNEL_OK")
</pallas_src>

<mosaic_0001>
module attributes {stable_mosaic.version = 11 : i64} {
  func.func @_iou_partial_kernel(%arg0: i32, %arg1: i32, %arg2: memref<16x128xf32, #tpu.memory_space<vmem>>, %arg3: memref<16x128xf32, #tpu.memory_space<vmem>>, %arg4: memref<1x8x128xf32, #tpu.memory_space<vmem>>, %arg5: memref<1x8x128xf32, #tpu.memory_space<vmem>>) attributes {dimension_semantics = [#tpu.dimension_semantics<parallel>, #tpu.dimension_semantics<arbitrary>], iteration_bounds = array<i64: 1, 1>, scalar_prefetch = 0 : i64, scratch_operands = 0 : i64, tpu.core_type = #tpu.core_type<tc>, window_params = [{transform_indices = @transform_0, window_bounds = array<i64: 16, 128>}, {transform_indices = @transform_1, window_bounds = array<i64: 16, 128>}, {transform_indices = @transform_2, window_bounds = array<i64: 1, 8, 128>}, {transform_indices = @transform_3, window_bounds = array<i64: 1, 8, 128>}]} {
    %c0_i32 = arith.constant 0 : i32
    %0 = arith.cmpi eq, %arg1, %c0_i32 : i32
    %1 = arith.extui %0 : i1 to i32
    %c0_i32_0 = arith.constant 0 : i32
    %2 = arith.cmpi ne, %1, %c0_i32_0 : i32
    scf.if %2 {
      %cst_17 = arith.constant 0.000000e+00 : f32
      %19 = vector.broadcast %cst_17 : f32 to vector<1x8x128xf32>
      %c0_18 = arith.constant 0 : index
      %c0_19 = arith.constant 0 : index
      %c0_20 = arith.constant 0 : index
      %20 = vector.load %arg4[%c0_18, %c0_19, %c0_20] : memref<1x8x128xf32, #tpu.memory_space<vmem>>, vector<1x8x128xf32>
      tpu.vector_store %arg4[%c0_18, %c0_19, %c0_20], %19 {strides = array<i32>} : memref<1x8x128xf32, #tpu.memory_space<vmem>>, vector<1x8x128xf32>,
      %cst_21 = arith.constant 0.000000e+00 : f32
      %21 = vector.broadcast %cst_21 : f32 to vector<1x8x128xf32>
      %c0_22 = arith.constant 0 : index
      %c0_23 = arith.constant 0 : index
      %c0_24 = arith.constant 0 : index
      %22 = vector.load %arg5[%c0_22, %c0_23, %c0_24] : memref<1x8x128xf32, #tpu.memory_space<vmem>>, vector<1x8x128xf32>
      tpu.vector_store %arg5[%c0_22, %c0_23, %c0_24], %21 {strides = array<i32>} : memref<1x8x128xf32, #tpu.memory_space<vmem>>, vector<1x8x128xf32>,
    } else {
    }
    %c0 = arith.constant 0 : index
    %c0_1 = arith.constant 0 : index
    %3 = vector.load %arg2[%c0, %c0_1] : memref<16x128xf32, #tpu.memory_space<vmem>>, vector<16x128xf32>
    %c0_2 = arith.constant 0 : index
    %c0_3 = arith.constant 0 : index
    %4 = vector.load %arg3[%c0_2, %c0_3] : memref<16x128xf32, #tpu.memory_space<vmem>>, vector<16x128xf32>
    %5 = arith.mulf %3, %4 : vector<16x128xf32>
    %6 = vector.shape_cast %5 : vector<16x128xf32> to vector<2x8x128xf32>
    %cst = arith.constant dense<0.000000e+00> : vector<8x128xf32>
    %7 = vector.multi_reduction <add>, %6, %cst [0] : vector<2x8x128xf32> to vector<8x128xf32>
    %8 = arith.addf %3, %4 : vector<16x128xf32>
    %9 = vector.shape_cast %8 : vector<16x128xf32> to vector<2x8x128xf32>
    %cst_4 = arith.constant dense<0.000000e+00> : vector<8x128xf32>
    %10 = vector.multi_reduction <add>, %9, %cst_4 [0] : vector<2x8x128xf32> to vector<8x128xf32>
    %c0_5 = arith.constant 0 : index
    %c0_6 = arith.constant 0 : index
    %c0_7 = arith.constant 0 : index
    %11 = vector.load %arg4[%c0_5, %c0_6, %c0_7] : memref<1x8x128xf32, #tpu.memory_space<vmem>>, vector<1x8x128xf32>
    %12 = vector.shape_cast %7 : vector<8x128xf32> to vector<1x8x128xf32>
    %13 = arith.addf %11, %12 : vector<1x8x128xf32>
    %c0_8 = arith.constant 0 : index
    %c0_9 = arith.constant 0 : index
    %c0_10 = arith.constant 0 : index
    %14 = vector.load %arg4[%c0_8, %c0_9, %c0_10] : memref<1x8x128xf32, #tpu.memory_space<vmem>>, vector<1x8x128xf32>
    tpu.vector_store %arg4[%c0_8, %c0_9, %c0_10], %13 {strides = array<i32>} : memref<1x8x128xf32, #tpu.memory_space<vmem>>, vector<1x8x128xf32>,
    %c0_11 = arith.constant 0 : index
    %c0_12 = arith.constant 0 : index
    %c0_13 = arith.constant 0 : index
    %15 = vector.load %arg5[%c0_11, %c0_12, %c0_13] : memref<1x8x128xf32, #tpu.memory_space<vmem>>, vector<1x8x128xf32>
    %16 = vector.shape_cast %10 : vector<8x128xf32> to vector<1x8x128xf32>
    %17 = arith.addf %15, %16 : vector<1x8x128xf32>
    %c0_14 = arith.constant 0 : index
    %c0_15 = arith.constant 0 : index
    %c0_16 = arith.constant 0 : index
    %18 = vector.load %arg5[%c0_14, %c0_15, %c0_16] : memref<1x8x128xf32, #tpu.memory_space<vmem>>, vector<1x8x128xf32>
    tpu.vector_store %arg5[%c0_14, %c0_15, %c0_16], %17 {strides = array<i32>} : memref<1x8x128xf32, #tpu.memory_space<vmem>>, vector<1x8x128xf32>,
    return
  }
  func.func @transform_0(%arg0: i32, %arg1: i32) -> (i32, i32) {
    %c1_i32 = arith.constant 1 : i32
    %0 = arith.muli %arg0, %c1_i32 : i32
    %1 = arith.addi %0, %arg1 : i32
    %c0_i32 = arith.constant 0 : i32
    %2 = arith.minsi %1, %c0_i32 : i32
    %c0_i32_0 = arith.constant 0 : i32
    %c0_i32_1 = arith.constant 0 : i32
    return %2, %c0_i32_0 : i32, i32
  }
  func.func @transform_1(%arg0: i32, %arg1: i32) -> (i32, i32) {
    %c1_i32 = arith.constant 1 : i32
    %0 = arith.muli %arg0, %c1_i32 : i32
    %1 = arith.addi %0, %arg1 : i32
    %c0_i32 = arith.constant 0 : i32
    %2 = arith.minsi %1, %c0_i32 : i32
    %c0_i32_0 = arith.constant 0 : i32
    %c0_i32_1 = arith.constant 0 : i32
    return %2, %c0_i32_0 : i32, i32
  }
  func.func @transform_2(%arg0: i32, %arg1: i32) -> (i32, i32, i32) {
    %c0_i32 = arith.constant 0 : i32
    %c0_i32_0 = arith.constant 0 : i32
    %c0_i32_1 = arith.constant 0 : i32
    return %arg0, %c0_i32, %c0_i32_0 : i32, i32, i32
  }
  func.func @transform_3(%arg0: i32, %arg1: i32) -> (i32, i32, i32) {
    %c0_i32 = arith.constant 0 : i32
    %c0_i32_0 = arith.constant 0 : i32
    %c0_i32_1 = arith.constant 0 : i32
    return %arg0, %c0_i32, %c0_i32_0 : i32, i32, i32
  }
}

</mosaic_0001>

<bundles_post_ra>
// kernel: tpu_custom_call.1
= control target key start
LH: loop header
LB: loop body
LE: loop exit
PB: predicated region body
PF: predicated region fallthrough
CT: control target
= control target key end

     0   :  { %9 = vsyncpa [#allocation3], 0  ;;  %s252_s0 = inlined_call_operand.hbm [shape: f32[16,128], index: 0, kind: input, shape index: {}]   ;;  %s253_s1 = inlined_call_operand.hbm [shape: f32[16,128], index: 1, kind: input, shape index: {}]   ;;  %s254_s2 = inlined_call_operand.hbm [shape: f32[1,8,128], index: 2, kind: output, shape index: {0}]   ;;  %s255_s3 = inlined_call_operand.hbm [shape: f32[1,8,128], index: 3, kind: output, shape index: {1}]  }
   0x1   :  { %10 = vsyncpa [#allocation6], 0 }
   0x2   :  { %11 = vsyncpa [#allocation4], 0 }
   0x3   :  { %12 = vsyncpa [#allocation9], 0  ;;  %s214_s12 = smov [#allocation2]  }
   0x4   :  { %s24_s13 = sshll.u32 %s214_s12, 4  ;;  %s25_s13 = int_to_ptr.vmem [resolvable:$true] %s24_s13 }
   0x5   :  { %s134_s14 = scalar_lea.vmem %s25_s13, 256  ;;  %p139_p1 = scmp.lt.s32.totalorder %s25_s13, %s25_s13 }
   0x6   :  { %p135_p0 = scmp.ne.s32.totalorder %s25_s13, %s134_s14  ;;  %p140_p2 = scmp.lt.s32.totalorder %s134_s14, %s134_s14 }
   0x8   :  { %p141_p3 = por %p140_p2, %p139_p1 }
   0xa   :  { %p142_p4 = pnand %p141_p3, %p135_p0 }
   0xc   :  { %145 = shalt.err (!%p142_p4)
}
   0xd   :  { %s215_s15 = smov 128   ;;  %s216_s16 = smov 8  }
   0xe   :  { %30 = dma.hbm_to_vmem [thread:$0]  %s252_s0, 256, %s25_s13, [#allocation3], %s215_s15, %s215_s15, %s216_s16  }
   0xf   :  { %s217_s19 = smov [#allocation5]  }
  0x10   :  { %s42_s20 = sshll.u32 %s217_s19, 4  ;;  %s43_s20 = int_to_ptr.vmem [resolvable:$true] %s42_s20 }
  0x11   :  { %s154_s21 = scalar_lea.vmem %s43_s20, 256  ;;  %p159_p6 = scmp.lt.s32.totalorder %s43_s20, %s43_s20 }
  0x12   :  { %p155_p5 = scmp.ne.s32.totalorder %s43_s20, %s154_s21  ;;  %p160_p7 = scmp.lt.s32.totalorder %s154_s21, %s154_s21 }
  0x14   :  { %p161_p8 = por %p160_p7, %p159_p6 }
  0x16   :  { %p162_p9 = pnand %p161_p8, %p155_p5 }
  0x18   :  { %165 = shalt.err (!%p162_p9)
}
  0x19   :  { %48 = dma.hbm_to_vmem [thread:$0]  %s253_s1, 256, %s43_s20, [#allocation6], %s215_s15, %s215_s15, %s216_s16  }
  0x1a   :  { %206 = dma.done.wait [#allocation3], 256  }
  0x1b   :  { %207 = vsyncadd [#allocation3], 4294967040 }
  0x1c   :  { %208 = dma.done.wait [#allocation6], 256  }
  0x1d   :  { %209 = vsyncadd [#allocation6], 4294967040  ;;  %v69_v0 = vld [vmem:[#allocation2] sm:$0xff]  ;;  %v70_v1 = vld [vmem:[#allocation2 + $0x8] sm:$0xff]  ;;  %s218_s0 = smov [#allocation7]   ;;  %s219_s25 = smov [#allocation8]  }
  0x1e   :  { %v71_v2 = vld [vmem:[#allocation5] sm:$0xff]  ;;  %v72_v3 = vld [vmem:[#allocation5 + $0x8] sm:$0xff]  ;;  %s91_s24 = sshll.u32 %s218_s0, 4  ;;  %s101_s26 = sshll.u32 %s219_s25, 4  ;;  %s92_s24 = int_to_ptr.vmem [resolvable:$true] %s91_s24  ;;  %s102_s26 = int_to_ptr.vmem [resolvable:$true] %s101_s26 }
  0x1f   :  { %v73_v4 = vmul.f32 %v71_v2, %v69_v0  ;;  %v76_v5 = vadd.f32 %v71_v2, %v69_v0  ;;  %v74_v6 = vmul.f32 %v72_v3, %v70_v1  ;;  %v77_v7 = vadd.f32 %v72_v3, %v70_v1  ;;  %s166_s1 = scalar_lea.vmem %s92_s24, 128  ;;  %p171_p11 = scmp.lt.s32.totalorder %s92_s24, %s92_s24 }
  0x20   :  { %p167_p10 = scmp.ne.s32.totalorder %s92_s24, %s166_s1  ;;  %p172_p12 = scmp.lt.s32.totalorder %s166_s1, %s166_s1 }
  0x21   :  { %v75_v8 = vadd.f32 %v74_v6, %v73_v4  ;;  %v78_v9 = vadd.f32 %v77_v7, %v76_v5 }
  0x22   :  { %p173_p13 = por %p172_p12, %p171_p11 }
  0x23   :  { %81 = vst [vmem:[#allocation7] sm:$0xff] %v75_v8  ;;  %84 = vst [vmem:[#allocation8] sm:$0xff] %v78_v9 }
  0x24   :  { %p174_p0 = pnand %p173_p13, %p167_p10 }
  0x26   :  { %177 = shalt.err (!%p174_p0)
}
  0x27   :  { %94 = dma.vmem_to_hbm [thread:$0]  %s92_s24, 128, %s254_s2, [#allocation4]  }
  0x28   :  { %s186_s29 = scalar_lea.vmem %s102_s26, 128  ;;  %p191_p2 = scmp.lt.s32.totalorder %s102_s26, %s102_s26 }
  0x29   :  { %p187_p1 = scmp.ne.s32.totalorder %s102_s26, %s186_s29  ;;  %p192_p3 = scmp.lt.s32.totalorder %s186_s29, %s186_s29 }
  0x2b   :  { %p193_p4 = por %p192_p3, %p191_p2 }
  0x2d   :  { %p194_p5 = pnand %p193_p4, %p187_p1 }
  0x2f   :  { %197 = shalt.err (!%p194_p5)
}
  0x30   :  { %104 = dma.vmem_to_hbm [thread:$0]  %s102_s26, 128, %s255_s3, [#allocation9]  }
  0x31   :  { %210 = dma.done.wait [#allocation4], 128  }
  0x32   :  { %211 = vsyncadd [#allocation4], 4294967168 }
  0x33   :  { %212 = dma.done.wait [#allocation9], 128  }
  0x34   :  { %213 = vsyncadd [#allocation9], 4294967168 }
  0x35   :  { %111 = vsyncpa [#allocation3], 1 }
  0x36   :  { %112 = vsyncpa [#allocation6], 1 }
  0x37   :  { %113 = vsyncpa [#allocation4], 1 }
  0x38   :  { %114 = vsyncpa [#allocation9], 1 }

</bundles_post_ra>
